<compile_context>
chip_gen: v6e
topology: v6e:2x2x1
jax: 0.10.0
libtpu: 0.0.40
codegen_flags: <defaults>
</compile_context>

<pallas_src>
import math
import random

import jax
import jax.numpy as jnp
import numpy as np
from jax.experimental import pallas as pl
from jax.experimental.pallas import tpu as pltpu


def _round_up(x, m):
    return (x + m - 1) // m * m


def _choose_tile(padded_dim, max_tile, align):
    """Largest multiple of `align` that divides `padded_dim`, capped at max_tile."""
    cap = max(align, min(max_tile, padded_dim))
    best = align
    for t in range(align, cap + 1, align):
        if padded_dim % t == 0:
            best = t
    return best


def _dylora_kernel(x_ref,      # (tn, ti)  bf16 : activations tile
                   wt_ref,     # (ti, to)  bf16 : W^T tile
                   p_ref,      # (tn, Rp)  bf16 : precomputed (x @ down^T) * scale
                   upt_ref,    # (Rp, to)  bf16 : up^T tile
                   bias_ref,   # (1,  to)  f32  : bias tile
                   o_ref,      # (tn, to)       : output tile
                   acc_ref):   # (tn, to)  f32 scratch : x @ W^T accumulator
    k = pl.program_id(2)

    @pl.when(k == 0)
    def _init():
        acc_ref[...] = jnp.zeros_like(acc_ref)

    acc_ref[...] += jnp.dot(x_ref[...], wt_ref[...],
                            preferred_element_type=jnp.float32)

    @pl.when(k == pl.num_programs(2) - 1)
    def _finalize():
        lora = jnp.dot(p_ref[...], upt_ref[...],
                       preferred_element_type=jnp.float32)
        o_ref[...] = (acc_ref[...] + lora + bias_ref[...]).astype(o_ref.dtype)


def dylora_linear_forward(x, weight, up_full, down_full, bias, *,
                          alpha, b, block_size,
                          tile_n=1024, tile_out=512, tile_in=1024,
                          compute_dtype=jnp.bfloat16, out_dtype=None):
    """Fused DyLoRA Linear forward.

    x         : (..., In)
    weight    : (Out, In)   PyTorch nn.Linear convention
    up_full   : (Out, R)    concatenated up_list
    down_full : (R, In)     concatenated down_list
    bias      : (Out,) or None
    out_dtype : output dtype; defaults to x.dtype. Pass jnp.bfloat16 if the
                downstream consumer tolerates bf16 activations (halves output
                HBM writeback).
    """
    orig_shape = x.shape
    In = orig_shape[-1]
    x2d = x.reshape(-1, In)
    N = x2d.shape[0]
    Out = weight.shape[0]
    R = up_full.shape[1]
    out_dtype = x.dtype if out_dtype is None else out_dtype

    # Minimal (sublane, lane)-aligned padded dims; tiles are chosen as divisors
    # of the padded dims so awkward shapes never pay double padding.
    Np = _round_up(N, 16)
    Outp = _round_up(Out, 128)
    Inp = _round_up(In, 128)
    Rp = _round_up(R, 128)          # one MXU lane tile; do not grow further

    tn = _choose_tile(Np, tile_n, 16)
    to = _choose_tile(Outp, tile_out, 128)
    ti = _choose_tile(Inp, tile_in, 128)

    # v7x megacore: if the batch axis has a single tile, ensure >= 2 parallel
    # Out tiles so both TensorCores get disjoint halves of the output.
    if Np // tn < 2 and Outp // to < 2 and Outp >= 2 * 128:
        to = _choose_tile(Outp, Outp // 2, 128)

    # ---- wrapper-side rank mask + scale + activation-side down projection ----
    bp1 = jnp.asarray(b, jnp.int32) + 1
    active = bp1 * jnp.int32(block_size)                 # dynamic active rank
    scale = jnp.float32(alpha) / bp1.astype(jnp.float32)
    rank_ids = jnp.arange(R, dtype=jnp.int32)
    down_masked = jnp.where((rank_ids < active)[:, None],
                            down_full.astype(jnp.float32),
                            jnp.float32(0.0)) * scale    # (R, In), f32

    # Done ONCE (N*In*R flops) in plain XLA instead of re-accumulating it for
    # every Out tile inside the kernel.
    p = jnp.dot(x2d.astype(jnp.float32), down_masked.T,
                preferred_element_type=jnp.float32)      # (N, R)

    def pad2(a, s0, s1):
        return jnp.pad(a, ((0, s0 - a.shape[0]), (0, s1 - a.shape[1])))

    if bias is None:
        bias = jnp.zeros((Out,), jnp.float32)

    x_p = pad2(x2d, Np, Inp).astype(compute_dtype)                    # (Np, Inp)
    wt_p = pad2(weight.T, Inp, Outp).astype(compute_dtype)            # (Inp, Outp)
    p_p = pad2(p, Np, Rp).astype(compute_dtype)                       # (Np, Rp)
    upt_p = pad2(up_full.T, Rp, Outp).astype(compute_dtype)           # (Rp, Outp)
    bias_p = pad2(bias.reshape(1, Out).astype(jnp.float32), 1, Outp)  # (1, Outp)

    grid = (Np // tn, Outp // to, Inp // ti)

    cd_bytes = np.dtype(compute_dtype).itemsize
    out_bytes = np.dtype(out_dtype).itemsize
    cost = pl.CostEstimate(
        flops=2 * Np * Inp * Outp + 2 * Np * Rp * Outp,
        transcendentals=0,
        bytes_accessed=(Np * Inp * cd_bytes * (Outp // to)     # x re-read per Out tile
                        + Inp * Outp * cd_bytes * (Np // tn)   # W^T re-read per N tile
                        + Np * Rp * cd_bytes * (Outp // to)
                        + Rp * Outp * cd_bytes * (Np // tn)
                        + Np * Outp * out_bytes))

    out_p = pl.pallas_call(
        _dylora_kernel,
        out_shape=jax.ShapeDtypeStruct((Np, Outp), out_dtype),
        grid_spec=pltpu.PrefetchScalarGridSpec(
            num_scalar_prefetch=0,
            grid=grid,
            in_specs=[
                pl.BlockSpec((tn, ti), lambda i, j, k: (i, k)),   # x
                pl.BlockSpec((ti, to), lambda i, j, k: (k, j)),   # W^T
                pl.BlockSpec((tn, Rp), lambda i, j, k: (i, 0)),   # p = (x @ down^T) * scale
                pl.BlockSpec((Rp, to), lambda i, j, k: (0, j)),   # up^T
                pl.BlockSpec((1, to), lambda i, j, k: (0, j)),    # bias
            ],
            out_specs=pl.BlockSpec((tn, to), lambda i, j, k: (i, j)),
            scratch_shapes=[pltpu.VMEM((tn, to), jnp.float32)],   # base matmul acc
        ),
        compiler_params=pltpu.CompilerParams(
            dimension_semantics=("parallel", "parallel", "arbitrary"),
            vmem_limit_bytes=32 * 1024 * 1024,
        ),
        cost_estimate=cost,
    )(x_p, wt_p, p_p, upt_p, bias_p)

    return out_p[:N, :Out].reshape(*orig_shape[:-1], Out)


if __name__ == "__main__":
    # Module config: org_module = nn.Linear(In, Out), lora_dim=4, block_size=1, alpha=1.
    B, S, In, Out = 2, 8, 32, 32
    lora_dim, block_size = 4, 1
    alpha = 1.0
    block_count = lora_dim // block_size

    key = jax.random.PRNGKey(0)
    kx, kw, kb, kup, kdown = jax.random.split(key, 5)

    # org_module weights / bias + input
    x = jax.random.normal(kx, (B, S, In), dtype=jnp.float32)
    weight = jax.random.normal(kw, (Out, In), dtype=jnp.float32) * 0.05
    bias = jax.random.normal(kb, (Out,), dtype=jnp.float32) * 0.01

    # DyLoRA params:
    #   down_list -> stacked (lora_dim, In), kaiming-uniform-like init
    #   up_list   -> stacked (Out, lora_dim); module inits these to zero, we use
    #                small deterministic random values so the LoRA path is exercised.
    bound = 1.0 / math.sqrt(In)
    down_full = jax.random.uniform(
        kdown, (lora_dim, In), minval=-bound, maxval=bound, dtype=jnp.float32)
    up_full = jax.random.normal(kup, (Out, lora_dim), dtype=jnp.float32) * 0.02

    # Deterministic stand-in for the module's random.randint block selection.
    b = random.Random(0).randint(0, block_count - 1)

    out = dylora_linear_forward(
        x, weight, up_full, down_full, bias,
        alpha=alpha, b=b, block_size=block_size)
    out = jax.block_until_ready(out)

    # Pure-JAX reference mirroring the torch forward exactly (f32).
    active = (b + 1) * block_size
    delta = up_full[:, :active] @ down_full[:active, :]
    w_eff = weight + delta * alpha / (b + 1)
    ref = x @ w_eff.T + bias

    # bf16 MXU operands with f32 accumulation -> loosened tolerance.
    np.testing.assert_allclose(np.asarray(out), np.asarray(ref), rtol=2e-2, atol=2e-2)
    print("KERNEL_OK")
</pallas_src>

<mosaic_0001>
module attributes {stable_mosaic.version = 11 : i64} {
  func.func @_dylora_kernel(%arg0: i32, %arg1: i32, %arg2: i32, %arg3: memref<16x128xbf16, #tpu.memory_space<vmem>>, %arg4: memref<128x128xbf16, #tpu.memory_space<vmem>>, %arg5: memref<16x128xbf16, #tpu.memory_space<vmem>>, %arg6: memref<128x128xbf16, #tpu.memory_space<vmem>>, %arg7: memref<1x128xf32, #tpu.memory_space<vmem>>, %arg8: memref<16x128xf32, #tpu.memory_space<vmem>>, %arg9: memref<16x128xf32, #tpu.memory_space<vmem>>) attributes {dimension_semantics = [#tpu.dimension_semantics<parallel>, #tpu.dimension_semantics<parallel>, #tpu.dimension_semantics<arbitrary>], iteration_bounds = array<i64: 1, 1, 1>, scalar_prefetch = 0 : i64, scratch_operands = 1 : i64, tpu.core_type = #tpu.core_type<tc>, window_params = [{transform_indices = @transform_0, window_bounds = array<i64: 16, 128>}, {transform_indices = @transform_1, window_bounds = array<i64: 128, 128>}, {transform_indices = @transform_2, window_bounds = array<i64: 16, 128>}, {transform_indices = @transform_3, window_bounds = array<i64: 128, 128>}, {transform_indices = @transform_4, window_bounds = array<i64: 1, 128>}, {transform_indices = @transform_5, window_bounds = array<i64: 16, 128>}]} {
    %c0_i32 = arith.constant 0 : i32
    %0 = arith.cmpi eq, %arg2, %c0_i32 : i32
    %1 = arith.extui %0 : i1 to i32
    %c0_i32_0 = arith.constant 0 : i32
    %2 = arith.cmpi ne, %1, %c0_i32_0 : i32
    scf.if %2 {
      %cst_10 = arith.constant 0.000000e+00 : f32
      %12 = vector.broadcast %cst_10 : f32 to vector<16x128xf32>
      %c0_11 = arith.constant 0 : index
      %c0_12 = arith.constant 0 : index
      %13 = vector.load %arg9[%c0_11, %c0_12] : memref<16x128xf32, #tpu.memory_space<vmem>>, vector<16x128xf32>
      tpu.vector_store %arg9[%c0_11, %c0_12], %12 {strides = array<i32>} : memref<16x128xf32, #tpu.memory_space<vmem>>, vector<16x128xf32>,
    } else {
    }
    %c0 = arith.constant 0 : index
    %c0_1 = arith.constant 0 : index
    %3 = vector.load %arg9[%c0, %c0_1] : memref<16x128xf32, #tpu.memory_space<vmem>>, vector<16x128xf32>
    %c0_2 = arith.constant 0 : index
    %c0_3 = arith.constant 0 : index
    %4 = vector.load %arg3[%c0_2, %c0_3] : memref<16x128xbf16, #tpu.memory_space<vmem>>, vector<16x128xbf16>
    %c0_4 = arith.constant 0 : index
    %c0_5 = arith.constant 0 : index
    %5 = vector.load %arg4[%c0_4, %c0_5] : memref<128x128xbf16, #tpu.memory_space<vmem>>, vector<128x128xbf16>
    %cst = arith.constant dense<0.000000e+00> : vector<16x128xf32>
    %6 = tpu.matmul %4, %5, %cst {dimension_numbers = #tpu.dot_dimension_numbers<[1], [0], [0], [1], [0, 0, 1, 1], [], []>} : vector<16x128xbf16>, vector<128x128xbf16>, vector<16x128xf32> -> vector<16x128xf32>
    %7 = arith.addf %3, %6 : vector<16x128xf32>
    %c0_6 = arith.constant 0 : index
    %c0_7 = arith.constant 0 : index
    %8 = vector.load %arg9[%c0_6, %c0_7] : memref<16x128xf32, #tpu.memory_space<vmem>>, vector<16x128xf32>
    tpu.vector_store %arg9[%c0_6, %c0_7], %7 {strides = array<i32>} : memref<16x128xf32, #tpu.memory_space<vmem>>, vector<16x128xf32>,
    %c0_i32_8 = arith.constant 0 : i32
    %9 = arith.cmpi eq, %arg2, %c0_i32_8 : i32
    %10 = arith.extui %9 : i1 to i32
    %c0_i32_9 = arith.constant 0 : i32
    %11 = arith.cmpi ne, %10, %c0_i32_9 : i32
    scf.if %11 {
      %c0_10 = arith.constant 0 : index
      %c0_11 = arith.constant 0 : index
      %12 = vector.load %arg5[%c0_10, %c0_11] : memref<16x128xbf16, #tpu.memory_space<vmem>>, vector<16x128xbf16>
      %c0_12 = arith.constant 0 : index
      %c0_13 = arith.constant 0 : index
      %13 = vector.load %arg6[%c0_12, %c0_13] : memref<128x128xbf16, #tpu.memory_space<vmem>>, vector<128x128xbf16>
      %cst_14 = arith.constant dense<0.000000e+00> : vector<16x128xf32>
      %14 = tpu.matmul %12, %13, %cst_14 {dimension_numbers = #tpu.dot_dimension_numbers<[1], [0], [0], [1], [0, 0, 1, 1], [], []>} : vector<16x128xbf16>, vector<128x128xbf16>, vector<16x128xf32> -> vector<16x128xf32>
      %c0_15 = arith.constant 0 : index
      %c0_16 = arith.constant 0 : index
      %15 = vector.load %arg9[%c0_15, %c0_16] : memref<16x128xf32, #tpu.memory_space<vmem>>, vector<16x128xf32>
      %16 = arith.addf %15, %14 : vector<16x128xf32>
      %c0_17 = arith.constant 0 : index
      %c0_18 = arith.constant 0 : index
      %17 = vector.load %arg7[%c0_17, %c0_18] : memref<1x128xf32, #tpu.memory_space<vmem>>, vector<1x128xf32>
      %18 = vector.broadcast %17 : vector<1x128xf32> to vector<16x128xf32>
      %19 = arith.addf %16, %18 : vector<16x128xf32>
      %c0_19 = arith.constant 0 : index
      %c0_20 = arith.constant 0 : index
      %20 = vector.load %arg8[%c0_19, %c0_20] : memref<16x128xf32, #tpu.memory_space<vmem>>, vector<16x128xf32>
      tpu.vector_store %arg8[%c0_19, %c0_20], %19 {strides = array<i32>} : memref<16x128xf32, #tpu.memory_space<vmem>>, vector<16x128xf32>,
    } else {
    }
    return
  }
  func.func @transform_0(%arg0: i32, %arg1: i32, %arg2: i32) -> (i32, i32) {
    %c0_i32 = arith.constant 0 : i32
    return %arg0, %arg2 : i32, i32
  }
  func.func @transform_1(%arg0: i32, %arg1: i32, %arg2: i32) -> (i32, i32) {
    %c0_i32 = arith.constant 0 : i32
    return %arg2, %arg1 : i32, i32
  }
  func.func @transform_2(%arg0: i32, %arg1: i32, %arg2: i32) -> (i32, i32) {
    %c0_i32 = arith.constant 0 : i32
    %c0_i32_0 = arith.constant 0 : i32
    return %arg0, %c0_i32 : i32, i32
  }
  func.func @transform_3(%arg0: i32, %arg1: i32, %arg2: i32) -> (i32, i32) {
    %c0_i32 = arith.constant 0 : i32
    %c0_i32_0 = arith.constant 0 : i32
    return %c0_i32, %arg1 : i32, i32
  }
  func.func @transform_4(%arg0: i32, %arg1: i32, %arg2: i32) -> (i32, i32) {
    %c0_i32 = arith.constant 0 : i32
    %c0_i32_0 = arith.constant 0 : i32
    return %c0_i32, %arg1 : i32, i32
  }
  func.func @transform_5(%arg0: i32, %arg1: i32, %arg2: i32) -> (i32, i32) {
    %c0_i32 = arith.constant 0 : i32
    return %arg0, %arg1 : i32, i32
  }
}

</mosaic_0001>

<bundles_post_ra>
// kernel: tpu_custom_call.1
= control target key start
LH: loop header
LB: loop body
LE: loop exit
PB: predicated region body
PF: predicated region fallthrough
CT: control target
= control target key end

     0   :  { %10 = vsyncpa [#allocation4], 0  ;;  %s637_s0 = inlined_call_operand.hbm [shape: bf16[16,128], index: 0, kind: input, shape index: {}]   ;;  %s638_s1 = inlined_call_operand.hbm [shape: bf16[128,128], index: 1, kind: input, shape index: {}]   ;;  %s639_s2 = inlined_call_operand.hbm [shape: bf16[16,128], index: 2, kind: input, shape index: {}]   ;;  %s640_s3 = inlined_call_operand.hbm [shape: bf16[128,128], index: 3, kind: input, shape index: {}]   ;;  %s641_s4 = inlined_call_operand.vmem [shape: f32[1,128], index: 4, kind: input, shape index: {}]   ;;  %s642_s5 = inlined_call_operand.hbm [shape: f32[16,128], index: 5, kind: output, shape index: {}]  }
   0x1   :  { %11 = vsyncpa [#allocation7], 0 }
   0x2   :  { %12 = vsyncpa [#allocation10], 0 }
   0x3   :  { %13 = vsyncpa [#allocation5], 0  ;;  %s566_s18 = smov [#allocation6]   ;;  %s567_s20 = smov [#allocation3]  }
   0x4   :  { %s31_s19 = sshll.u32 %s566_s18, 4  ;;  %s19_s21 = sshll.u32 %s567_s20, 4  ;;  %s32_s19 = int_to_ptr.vmem [resolvable:$true] %s31_s19  ;;  %s20_s21 = int_to_ptr.vmem [resolvable:$true] %s19_s21 }
   0x5   :  { %s466_s22 = scalar_lea.vmem %s32_s19, 1024  ;;  %p471_p1 = scmp.lt.s32.totalorder %s32_s19, %s32_s19 }
   0x6   :  { %p467_p0 = scmp.ne.s32.totalorder %s32_s19, %s466_s22  ;;  %p472_p2 = scmp.lt.s32.totalorder %s466_s22, %s466_s22 }
   0x8   :  { %p473_p3 = por %p472_p2, %p471_p1 }
   0xa   :  { %p474_p4 = pnand %p473_p3, %p467_p0 }
   0xc   :  { %477 = shalt.err (!%p474_p4)
}
   0xd   :  { %s568_s23 = smov 64   ;;  %s569_s24 = smov 4  }
   0xe   :  { %37 = dma.hbm_to_vmem [thread:$0]  %s638_s1, 1024, %s32_s19, [#allocation7], %s568_s23, %s568_s23, %s569_s24  }
   0xf   :  { %s486_s27 = scalar_lea.vmem %s20_s21, 128  ;;  %p491_p6 = scmp.lt.s32.totalorder %s20_s21, %s20_s21 }
  0x10   :  { %p487_p5 = scmp.ne.s32.totalorder %s20_s21, %s486_s27  ;;  %p492_p7 = scmp.lt.s32.totalorder %s486_s27, %s486_s27 }
  0x12   :  { %p493_p8 = por %p492_p7, %p491_p6 }
  0x14   :  { %p494_p9 = pnand %p493_p8, %p487_p5 }
  0x16   :  { %497 = shalt.err (!%p494_p9)
}
  0x17   :  { %25 = dma.hbm_to_vmem [thread:$0]  %s637_s0, 128, %s20_s21, [#allocation4], %s568_s23, %s568_s23, %s569_s24  }
  0x18   :  { %s570_s30 = smov [#allocation8]   ;;  %s571_s7 = smov [#allocation9]  }
  0x19   :  { %s43_s6 = sshll.u32 %s570_s30, 4  ;;  %s55_s8 = sshll.u32 %s571_s7, 4  ;;  %s44_s6 = int_to_ptr.vmem [resolvable:$true] %s43_s6  ;;  %s56_s8 = int_to_ptr.vmem [resolvable:$true] %s55_s8 }
  0x1a   :  { %s506_s1 = scalar_lea.vmem %s44_s6, 128  ;;  %p511_p11 = scmp.lt.s32.totalorder %s44_s6, %s44_s6 }
  0x1b   :  { %p507_p10 = scmp.ne.s32.totalorder %s44_s6, %s506_s1  ;;  %p512_p12 = scmp.lt.s32.totalorder %s506_s1, %s506_s1 }
  0x1d   :  { %p513_p13 = por %p512_p12, %p511_p11 }
  0x1f   :  { %p514_p0 = pnand %p513_p13, %p507_p10 }
  0x21   :  { %517 = shalt.err (!%p514_p0)
}
  0x22   :  { %49 = dma.hbm_to_vmem [thread:$0]  %s639_s2, 128, %s44_s6, [#allocation7], %s568_s23, %s568_s23, %s569_s24  }
  0x23   :  { %s526_s0 = scalar_lea.vmem %s56_s8, 1024  ;;  %p531_p2 = scmp.lt.s32.totalorder %s56_s8, %s56_s8 }
  0x24   :  { %p527_p1 = scmp.ne.s32.totalorder %s56_s8, %s526_s0  ;;  %p532_p3 = scmp.lt.s32.totalorder %s526_s0, %s526_s0 }
  0x26   :  { %p533_p4 = por %p532_p3, %p531_p2 }
  0x28   :  { %p534_p5 = pnand %p533_p4, %p527_p1 }
  0x2a   :  { %537 = shalt.err (!%p534_p5)
}
  0x2b   :  { %61 = dma.hbm_to_vmem [thread:$0]  %s640_s3, 1024, %s56_s8, [#allocation10], %s568_s23, %s568_s23, %s569_s24  }
  0x2c   :  { %558 = dma.done.wait [#allocation4], 128  }
  0x2d   :  { %559 = vsyncadd [#allocation4], 4294967168 }
  0x2e   :  { %560 = dma.done.wait [#allocation7], 1152  }
  0x2f   :  { %561 = vsyncadd [#allocation7], 4294966144 }
  0x30   :  { %562 = dma.done.wait [#allocation10], 1024  }
  0x31   :  { %563 = vsyncadd [#allocation10], 4294966272  ;;  %v572_v0 = vmov 0.0   ;;  %vm573_vm0 = vmmov 0   ;;  %v440_v1 = vld [vmem:[#allocation6 + $0x38] sm:$0xff]   ;;  %v441_v2 = vld [vmem:[#allocation9 + $0x38] sm:$0xff]  }
  0x32   :  { %389 = vmatprep.subr.bf16.mxu0 %v572_v0  ;;  %409 = vmatprep.subr.bf16.mxu1 %v572_v0  ;;  %v442_v3 = vld [vmem:[#allocation6 + $0x30] sm:$0xff]   ;;  %v443_v4 = vld [vmem:[#allocation9 + $0x30] sm:$0xff]   ;;  %v444_v5 = vld [vmem:[#allocation6 + $0x28] sm:$0xff]   ;;  %s574_s13 = smov [#allocation11]  }
  0x33   :  { %405 = vmatprep.mubr.msk.bf16.mxu0 %vm573_vm0, %v572_v0  ;;  %425 = vmatprep.mubr.msk.bf16.mxu1 %vm573_vm0, %v572_v0  ;;  %v445_v6 = vld [vmem:[#allocation9 + $0x28] sm:$0xff]   ;;  %v446_v7 = vld [vmem:[#allocation6 + $0x20] sm:$0xff]   ;;  %v447_v8 = vld [vmem:[#allocation9 + $0x20] sm:$0xff]   ;;  %s338_s14 = sshll.u32 %s574_s13, 4  ;;  %s339_s14 = int_to_ptr.vmem [resolvable:$true] %s338_s14 }
  0x34   :  { %390 = vmatpush3.bf16.msra.mxu0 %v440_v1  ;;  %410 = vmatpush3.bf16.msra.mxu1 %v441_v2  ;;  %v448_v9 = vld [vmem:[#allocation6 + $0x18] sm:$0xff]   ;;  %v449_v10 = vld [vmem:[#allocation9 + $0x18] sm:$0xff]   ;;  %v450_v11 = vld [vmem:[#allocation6 + $0x10] sm:$0xff]   ;;  %s538_s15 = scalar_lea.vmem %s339_s14, 256  ;;  %p543_p7 = scmp.lt.s32.totalorder %s339_s14, %s339_s14 }
  0x35   :  { %391 = vmatprep.subr.bf16.mxu0 %v572_v0  ;;  %411 = vmatprep.subr.bf16.mxu1 %v572_v0  ;;  %v451_v12 = vld [vmem:[#allocation9 + $0x10] sm:$0xff]   ;;  %v452_v13 = vld [vmem:[#allocation6 + $0x8] sm:$0xff]   ;;  %v453_v14 = vld [vmem:[#allocation9 + $0x8] sm:$0xff]   ;;  %p539_p6 = scmp.ne.s32.totalorder %s339_s14, %s538_s15  ;;  %p544_p8 = scmp.lt.s32.totalorder %s538_s15, %s538_s15 }
  0x36   :  { %v454_v15 = vld [vmem:[#allocation6] sm:$0xff]   ;;  %v455_v16 = vld [vmem:[#allocation9] sm:$0xff]   ;;  %v456_v17 = vld [vmem:[#allocation3] sm:$0xff]  }
  0x37   :  { %v457_v18 = vld [vmem:[#allocation8] sm:$0xff]   ;;  %v370_v21 = vld [vmem:[%s641_s4] ss:$0 sm:$0xff]  ;;  %p545_p9 = por %p544_p8, %p543_p7 }
  0x38   :  { %392 = vmatpush3.bf16.msra.mxu0 %v442_v3  ;;  %412 = vmatpush3.bf16.msra.mxu1 %v443_v4 }
  0x39   :  { %393 = vmatprep.subr.bf16.mxu0 %v572_v0  ;;  %413 = vmatprep.subr.bf16.mxu1 %v572_v0  ;;  %p546_p10 = pnand %p545_p9, %p539_p6 }
  0x3c   :  { %394 = vmatpush3.bf16.msra.mxu0 %v444_v5  ;;  %414 = vmatpush3.bf16.msra.mxu1 %v445_v6 }
  0x3d   :  { %395 = vmatprep.subr.bf16.mxu0 %v572_v0  ;;  %415 = vmatprep.subr.bf16.mxu1 %v572_v0 }
  0x40   :  { %396 = vmatpush3.bf16.msra.mxu0 %v446_v7  ;;  %416 = vmatpush3.bf16.msra.mxu1 %v447_v8 }
  0x41   :  { %397 = vmatprep.subr.bf16.mxu0 %v572_v0  ;;  %417 = vmatprep.subr.bf16.mxu1 %v572_v0 }
  0x44   :  { %398 = vmatpush3.bf16.msra.mxu0 %v448_v9  ;;  %418 = vmatpush3.bf16.msra.mxu1 %v449_v10 }
  0x45   :  { %399 = vmatprep.subr.bf16.mxu0 %v572_v0  ;;  %419 = vmatprep.subr.bf16.mxu1 %v572_v0 }
  0x48   :  { %400 = vmatpush3.bf16.msra.mxu0 %v450_v11  ;;  %420 = vmatpush3.bf16.msra.mxu1 %v451_v12 }
  0x49   :  { %401 = vmatprep.subr.bf16.mxu0 %v572_v0  ;;  %421 = vmatprep.subr.bf16.mxu1 %v572_v0 }
  0x4c   :  { %402 = vmatpush3.bf16.msra.mxu0 %v452_v13  ;;  %422 = vmatpush3.bf16.msra.mxu1 %v453_v14 }
  0x4d   :  { %403 = vmatprep.subr.bf16.mxu0 %v572_v0  ;;  %423 = vmatprep.subr.bf16.mxu1 %v572_v0 }
  0x50   :  { %404 = vmatpush3.bf16.msra.mxu0 %v454_v15  ;;  %424 = vmatpush3.bf16.msra.mxu1 %v455_v16 }
  0x53   :  { %406 = vmatmul.mubr.bf16.vlgmr.msra.gmra.mxu0 %v456_v17  ;;  %426 = vmatmul.mubr.bf16.vlgmr.msra.gmra.mxu1 %v457_v18 }
 0x113   :  { %v191_v19 = vpop.f32.mrf.mxu0  ;;  %v311_v20 = vpop.f32.mrf.mxu1 }
 0x114   :  { %v320_v22 = vadd.f32 %v311_v20, %v191_v19 }
 0x115   :  { %v407_v23 = vpop.f32.mrf.mxu0  ;;  %v427_v24 = vpop.f32.mrf.mxu1 }
 0x116   :  { %v329_v25 = vadd.f32 %v370_v21, %v320_v22 }
 0x117   :  { %v194_v26 = vpop.f32.mrf.mxu0  ;;  %v314_v27 = vpop.f32.mrf.mxu1 }
 0x118   :  { %331 = vst [vmem:[#allocation11] sm:$0xff] %v329_v25  ;;  %v321_v28 = vadd.f32 %v314_v27, %v194_v26 }
 0x119   :  { %v408_v29 = vpop.f32.mrf.mxu0  ;;  %v428_v30 = vpop.f32.mrf.mxu1 }
 0x11a   :  { %v330_v31 = vadd.f32 %v370_v21, %v321_v28 }
 0x11c   :  { %332 = vst [vmem:[#allocation11 + $0x8] sm:$0xff] %v330_v31 }
 0x11d   :  { %549 = shalt.err (!%p546_p10)
}
 0x11e   :  { %s575_s4 = smov 128   ;;  %s576_s16 = smov 8  }
 0x11f   :  { %344 = dma.vmem_to_hbm [thread:$0]  %s339_s14, 256, %s642_s5, [#allocation5], %s575_s4, %s575_s4, %s576_s16  }
 0x120   :  { %564 = dma.done.wait [#allocation5], 256  }
 0x121   :  { %565 = vsyncadd [#allocation5], 4294967040 }
 0x122   :  { %348 = vsyncpa [#allocation4], 1 }
 0x123   :  { %349 = vsyncpa [#allocation7], 1 }
 0x124   :  { %350 = vsyncpa [#allocation10], 1 }
 0x125   :  { %351 = vsyncpa [#allocation5], 1 }

</bundles_post_ra>
